<compile_context>
chip_gen: v6e
topology: v6e:2x2x1
jax: 0.10.0
libtpu: 0.0.40
codegen_flags: <defaults>
</compile_context>

<pallas_src>
import functools

import jax
import jax.numpy as jnp
from jax.experimental import pallas as pl
from jax.experimental.pallas import tpu as pltpu

_LANE = 128
_NEG_BIG = -1e30  # "minus infinity" for masked (padded) class lanes


def _round_up(n, m):
    return ((n + m - 1) // m) * m


def _pad_to(a, shape):
    pads = [(0, t - s) for s, t in zip(a.shape, shape)]
    if all(p == (0, 0) for p in pads):
        return a
    return jnp.pad(a, pads)


@functools.lru_cache(maxsize=1)
def _vmem_budget_bytes():
    """~80% of this chip's physical VMEM (headroom for compiler scratch/sems)."""
    try:
        cap = int(pltpu.get_tpu_info().vmem_capacity_bytes)
    except Exception:
        cap = 64 << 20  # conservative (v7x-sized) fallback
    return max(int(cap * 0.8), 16 << 20)


@functools.lru_cache(maxsize=1)
def _single_buffer_weights_supported():
    """Probe whether pipeline_mode=pl.Buffered(1) lowers on this jax/TPU."""
    try:
        w_spec = pl.BlockSpec((8, _LANE), lambda i: (0, 0),
                              pipeline_mode=pl.Buffered(1))

        def k(x_ref, o_ref):
            o_ref[...] = x_ref[...] + 1.0

        f = pl.pallas_call(
            k,
            out_shape=jax.ShapeDtypeStruct((16, _LANE), jnp.float32),
            grid_spec=pltpu.PrefetchScalarGridSpec(
                num_scalar_prefetch=0,
                grid=(2,),
                in_specs=[w_spec],
                out_specs=pl.BlockSpec((8, _LANE), lambda i: (i, 0)),
            ),
            compiler_params=pltpu.CompilerParams(
                dimension_semantics=("arbitrary",)),
        )
        jax.block_until_ready(f(jnp.zeros((8, _LANE), jnp.float32)))
        return True
    except Exception:
        return False


def _full_spec(arr, single_buffer):
    """Grid-invariant operand: whole array resident, constant index map."""
    nd = arr.ndim
    idx = lambda i, _nd=nd: (0,) * _nd
    if single_buffer:
        # never re-fetched -> one buffer is enough; halves resident weight VMEM
        return pl.BlockSpec(arr.shape, idx, pipeline_mode=pl.Buffered(1))
    return pl.BlockSpec(arr.shape, idx)


def _masked_log_softmax(z, num_valid):
    """Numerically stable log-softmax over the last axis, ignoring padded lanes."""
    tm, cp = z.shape
    if cp > num_valid:
        lane = jax.lax.broadcasted_iota(jnp.int32, (tm, cp), 1)
        z = jnp.where(lane < num_valid, z, _NEG_BIG)
    m = jnp.max(z, axis=-1, keepdims=True)
    lse = m + jnp.log(jnp.sum(jnp.exp(z - m), axis=-1, keepdims=True))
    return z - lse


def _mlp_kernel(*refs, num_valid):
    # refs = (x, w1, b1, w2, b2[, w3, b3], out)
    x_ref, o_ref = refs[0], refs[-1]
    wb = refs[1:-1]
    n_layers = len(wb) // 2
    cd = wb[0].dtype                    # matmul operand dtype (f32 or bf16)
    h = x_ref[...].astype(cd)           # in-kernel cast: VPU, hidden under MXU/DMA
    for l in range(n_layers):
        w_ref, b_ref = wb[2 * l], wb[2 * l + 1]
        z = jnp.dot(h, w_ref[...], preferred_element_type=jnp.float32)
        z = jnp.maximum(z + b_ref[...], 0.0)        # bias + ReLU in f32
        h = z.astype(cd) if l + 1 < n_layers else z
    o_ref[...] = _masked_log_softmax(h, num_valid).astype(o_ref.dtype)


@functools.partial(jax.jit,
                   static_argnames=("row_tile", "compute_dtype", "out_dtype"))
def mlp_forward(x, params, row_tile=2048, compute_dtype=jnp.float32,
                out_dtype=None):
    """x: (B, S, input_size).  params: dict of (in, out) weights / (1, out) biases.

    compute_dtype controls the matmul *operand* dtype (f32 or bf16 -- bf16 is
    the native MXU path on v6e/v7x).  Accumulation and all elementwise math
    (bias, ReLU, log-softmax) stay in f32.  out_dtype defaults to x.dtype.
    """
    B, S, F = x.shape
    N = B * S
    x2d = x.reshape(N, F)
    out_dtype = x.dtype if out_dtype is None else out_dtype

    has_h2 = "w3" in params
    w1, b1 = params["w1"], params["b1"]
    w2, b2 = params["w2"], params["b2"]
    C = (params["w3"] if has_h2 else w2).shape[1]  # num_classes

    # ---- lane-dense padding of every layer's output dim (tiny weight copies) ----
    cd = jnp.dtype(compute_dtype)
    h1p = _round_up(w1.shape[1], _LANE)
    Cp = _round_up(C, _LANE)
    w1c = _pad_to(w1, (F, h1p)).astype(cd)
    b1p = _pad_to(b1, (1, h1p))
    if has_h2:
        h2p = _round_up(w2.shape[1], _LANE)
        w2c = _pad_to(w2, (h1p, h2p)).astype(cd)
        b2p = _pad_to(b2, (1, h2p))
        w3c = _pad_to(params["w3"], (h2p, Cp)).astype(cd)
        b3p = _pad_to(params["b3"], (1, Cp))
        wb = [w1c, b1p, w2c, b2p, w3c, b3p]
    else:
        h2p = 0
        w2c = _pad_to(w2, (h1p, Cp)).astype(cd)
        b2p = _pad_to(b2, (1, Cp))
        wb = [w1c, b1p, w2c, b2p]

    # ---- per-generation VMEM budget -> row tile ----
    single_buf = _single_buffer_weights_supported()
    wbuf = 1 if single_buf else 2
    w_resident = wbuf * sum(int(a.size) * a.dtype.itemsize for a in wb)
    x_bytes = x2d.dtype.itemsize
    o_bytes = jnp.dtype(out_dtype).itemsize
    # per-row VMEM: double-buffered x/out tiles + f32 intermediate activations
    per_row = 2 * F * x_bytes + 2 * Cp * o_bytes + (h1p + h2p + 2 * Cp) * 4
    budget = _vmem_budget_bytes()
    sub = 16 if cd.itemsize == 2 else (32 if cd.itemsize == 1 else 8)
    if w_resident + sub * per_row > budget:
        # TODO(synk): add a tiled-weight / K-reduction fallback for hidden dims
        # whose resident weights exceed the per-generation VMEM budget.
        raise ValueError(
            f"MLP weights ({w_resident} B resident) exceed the VMEM budget "
            f"({budget} B) for the resident-weight kernel on this TPU.")
    tm_max = max((((budget - w_resident) // per_row) // sub) * sub, sub)
    tm = min(_round_up(row_tile, sub), tm_max, _round_up(N, sub))
    # >= 2 grid steps when N allows it so "parallel" rows shard over v7x's 2 TCs
    if N >= 2 * sub:
        tm = min(tm, _round_up(pl.cdiv(N, 2), sub))
    grid = (pl.cdiv(N, tm),)  # ragged last block handled by Pallas edge clamping

    in_specs = [pl.BlockSpec((tm, F), lambda i: (i, 0))]
    in_specs += [_full_spec(a, single_buf) for a in wb]

    vmem_limit = int(min(budget,
                         max(w_resident + tm * per_row + (4 << 20), 16 << 20)))

    out = pl.pallas_call(
        functools.partial(_mlp_kernel, num_valid=C),
        out_shape=jax.ShapeDtypeStruct((N, Cp), out_dtype),
        grid_spec=pltpu.PrefetchScalarGridSpec(
            num_scalar_prefetch=0,
            grid=grid,
            in_specs=in_specs,
            out_specs=pl.BlockSpec((tm, Cp), lambda i: (i, 0)),
        ),
        compiler_params=pltpu.CompilerParams(
            dimension_semantics=("parallel",),
            vmem_limit_bytes=vmem_limit),
    )(x2d, *wb)

    # TODO(synk): consumers that can read padded logits should take out[..., :C]
    # directly instead of this slice re-reading the lane-dense slab.
    return out[:, :C].reshape(B, S, C)


def init_params(key, input_size, h1, num_classes, h2=None):
    """Deterministic synthetic parameters.  Weights stored as (in, out)."""
    ks = jax.random.split(key, 6)

    def linear(kw, kb, fan_in, fan_out):
        bound = 1.0 / jnp.sqrt(fan_in)
        w = jax.random.uniform(kw, (fan_in, fan_out), jnp.float32, -bound, bound)
        b = jax.random.uniform(kb, (1, fan_out), jnp.float32, -bound, bound)
        return w, b

    params = {}
    params["w1"], params["b1"] = linear(ks[0], ks[1], input_size, h1)
    if h2 is None:
        params["w2"], params["b2"] = linear(ks[2], ks[3], h1, num_classes)
    else:
        params["w2"], params["b2"] = linear(ks[2], ks[3], h1, h2)
        params["w3"], params["b3"] = linear(ks[4], ks[5], h2, num_classes)
    return params


def mlp_reference(x, params):
    """Plain-JAX reference mirroring the PyTorch forward."""
    h = jnp.maximum(x @ params["w1"] + params["b1"][0], 0.0)
    h = jnp.maximum(h @ params["w2"] + params["b2"][0], 0.0)
    if "w3" in params:
        h = jnp.maximum(h @ params["w3"] + params["b3"][0], 0.0)
    return jax.nn.log_softmax(h, axis=2)


if __name__ == "__main__":
    key = jax.random.PRNGKey(0)
    k_x, k_p2, k_p3 = jax.random.split(key, 3)

    B, S, input_size, h1, h2, num_classes = 2, 8, 32, 32, 24, 16
    x = jax.random.normal(k_x, (B, S, input_size), jnp.float32)

    # h2 is None path (2 linear layers), f32
    params2 = init_params(k_p2, input_size, h1, num_classes, h2=None)
    out2 = jax.block_until_ready(mlp_forward(x, params2))
    ref2 = mlp_reference(x, params2)
    assert out2.shape == (B, S, num_classes)
    assert jnp.allclose(out2, ref2, atol=1e-5, rtol=1e-5)

    # h2 given path (3 linear layers), f32
    params3 = init_params(k_p3, input_size, h1, num_classes, h2=h2)
    out3 = jax.block_until_ready(mlp_forward(x, params3))
    ref3 = mlp_reference(x, params3)
    assert out3.shape == (B, S, num_classes)
    assert jnp.allclose(out3, ref3, atol=1e-5, rtol=1e-5)

    # explicit small row tile (forces multi-step grid / ragged machinery)
    out3_tiled = jax.block_until_ready(mlp_forward(x, params3, row_tile=8))
    assert jnp.allclose(out3_tiled, ref3, atol=1e-5, rtol=1e-5)

    # bf16 matmul operands (native v6e/v7x MXU path); f32 accumulation and
    # elementwise math -- loose tolerance reflects bf16 activation round-off.
    out3_bf16 = jax.block_until_ready(
        mlp_forward(x, params3, compute_dtype=jnp.bfloat16))
    assert out3_bf16.shape == (B, S, num_classes)
    assert jnp.allclose(out3_bf16, ref3, atol=1e-1, rtol=1e-1)

    print("KERNEL_OK")
</pallas_src>

<mosaic_0001>
module attributes {stable_mosaic.version = 11 : i64} {
  func.func @_mlp_kernel(%arg0: i32, %arg1: memref<8x32xf32, #tpu.memory_space<vmem>>, %arg2: memref<32x128xf32, #tpu.memory_space<vmem>>, %arg3: memref<1x128xf32, #tpu.memory_space<vmem>>, %arg4: memref<128x128xf32, #tpu.memory_space<vmem>>, %arg5: memref<1x128xf32, #tpu.memory_space<vmem>>, %arg6: memref<8x128xf32, #tpu.memory_space<vmem>>) attributes {dimension_semantics = [#tpu.dimension_semantics<parallel>], iteration_bounds = array<i64: 2>, scalar_prefetch = 0 : i64, scratch_operands = 0 : i64, tpu.core_type = #tpu.core_type<tc>, window_params = [{transform_indices = @transform_0, window_bounds = array<i64: 8, 32>}, {pipeline_mode = #tpu.pipeline_mode<synchronous>, transform_indices = @transform_1, window_bounds = array<i64: 32, 128>}, {pipeline_mode = #tpu.pipeline_mode<synchronous>, transform_indices = @transform_2, window_bounds = array<i64: 1, 128>}, {pipeline_mode = #tpu.pipeline_mode<synchronous>, transform_indices = @transform_3, window_bounds = array<i64: 128, 128>}, {pipeline_mode = #tpu.pipeline_mode<synchronous>, transform_indices = @transform_4, window_bounds = array<i64: 1, 128>}, {transform_indices = @transform_5, window_bounds = array<i64: 8, 128>}]} {
    %c0 = arith.constant 0 : index
    %c0_0 = arith.constant 0 : index
    %0 = vector.load %arg1[%c0, %c0_0] : memref<8x32xf32, #tpu.memory_space<vmem>>, vector<8x32xf32>
    %c0_1 = arith.constant 0 : index
    %c0_2 = arith.constant 0 : index
    %1 = vector.load %arg2[%c0_1, %c0_2] : memref<32x128xf32, #tpu.memory_space<vmem>>, vector<32x128xf32>
    %cst = arith.constant dense<0.000000e+00> : vector<8x128xf32>
    %2 = tpu.matmul %0, %1, %cst {dimension_numbers = #tpu.dot_dimension_numbers<[1], [0], [0], [1], [0, 0, 1, 1], [], []>} : vector<8x32xf32>, vector<32x128xf32>, vector<8x128xf32> -> vector<8x128xf32>
    %c0_3 = arith.constant 0 : index
    %c0_4 = arith.constant 0 : index
    %3 = vector.load %arg3[%c0_3, %c0_4] : memref<1x128xf32, #tpu.memory_space<vmem>>, vector<1x128xf32>
    %4 = vector.broadcast %3 : vector<1x128xf32> to vector<8x128xf32>
    %5 = arith.addf %2, %4 : vector<8x128xf32>
    %cst_5 = arith.constant 0.000000e+00 : f32
    %6 = vector.broadcast %cst_5 : f32 to vector<8x128xf32>
    %7 = arith.maximumf %5, %6 : vector<8x128xf32>
    %c0_6 = arith.constant 0 : index
    %c0_7 = arith.constant 0 : index
    %8 = vector.load %arg4[%c0_6, %c0_7] : memref<128x128xf32, #tpu.memory_space<vmem>>, vector<128x128xf32>
    %cst_8 = arith.constant dense<0.000000e+00> : vector<8x128xf32>
    %9 = tpu.matmul %7, %8, %cst_8 {dimension_numbers = #tpu.dot_dimension_numbers<[1], [0], [0], [1], [0, 0, 1, 1], [], []>} : vector<8x128xf32>, vector<128x128xf32>, vector<8x128xf32> -> vector<8x128xf32>
    %c0_9 = arith.constant 0 : index
    %c0_10 = arith.constant 0 : index
    %10 = vector.load %arg5[%c0_9, %c0_10] : memref<1x128xf32, #tpu.memory_space<vmem>>, vector<1x128xf32>
    %11 = vector.broadcast %10 : vector<1x128xf32> to vector<8x128xf32>
    %12 = arith.addf %9, %11 : vector<8x128xf32>
    %cst_11 = arith.constant 0.000000e+00 : f32
    %13 = vector.broadcast %cst_11 : f32 to vector<8x128xf32>
    %14 = arith.maximumf %12, %13 : vector<8x128xf32>
    %15 = tpu.iota {dimensions = array<i32: 1>} : vector<8x128xi32>
    %c16_i32 = arith.constant 16 : i32
    %16 = vector.broadcast %c16_i32 : i32 to vector<8x128xi32>
    %17 = arith.cmpi slt, %15, %16 : vector<8x128xi32>
    %cst_12 = arith.constant -1.000000e+30 : f32
    %18 = vector.broadcast %cst_12 : f32 to vector<8x128xf32>
    %19 = arith.select %17, %14, %18 : vector<8x128xi1>, vector<8x128xf32>
    %cst_13 = arith.constant dense<0xFF800000> : vector<8xf32>
    %20 = vector.multi_reduction <maximumf>, %19, %cst_13 [1] : vector<8x128xf32> to vector<8xf32>
    %21 = vector.shape_cast %20 : vector<8xf32> to vector<8x1xf32>
    %22 = vector.broadcast %21 : vector<8x1xf32> to vector<8x128xf32>
    %23 = arith.subf %19, %22 : vector<8x128xf32>
    %24 = math.exp %23 : vector<8x128xf32>
    %cst_14 = arith.constant dense<0.000000e+00> : vector<8xf32>
    %25 = vector.multi_reduction <add>, %24, %cst_14 [1] : vector<8x128xf32> to vector<8xf32>
    %26 = vector.shape_cast %25 : vector<8xf32> to vector<8x1xf32>
    %27 = math.log %26 : vector<8x1xf32>
    %28 = arith.addf %21, %27 : vector<8x1xf32>
    %29 = vector.broadcast %28 : vector<8x1xf32> to vector<8x128xf32>
    %30 = arith.subf %19, %29 : vector<8x128xf32>
    %c0_15 = arith.constant 0 : index
    %c0_16 = arith.constant 0 : index
    %31 = vector.load %arg6[%c0_15, %c0_16] : memref<8x128xf32, #tpu.memory_space<vmem>>, vector<8x128xf32>
    tpu.vector_store %arg6[%c0_15, %c0_16], %30 {strides = array<i32>} : memref<8x128xf32, #tpu.memory_space<vmem>>, vector<8x128xf32>,
    return
  }
  func.func @transform_0(%arg0: i32) -> (i32, i32) {
    %c0_i32 = arith.constant 0 : i32
    %c0_i32_0 = arith.constant 0 : i32
    return %arg0, %c0_i32 : i32, i32
  }
  func.func @transform_1(%arg0: i32) -> (i32, i32) {
    %c0_i32 = arith.constant 0 : i32
    %c0_i32_0 = arith.constant 0 : i32
    %c0_i32_1 = arith.constant 0 : i32
    return %c0_i32, %c0_i32_0 : i32, i32
  }
  func.func @transform_2(%arg0: i32) -> (i32, i32) {
    %c0_i32 = arith.constant 0 : i32
    %c0_i32_0 = arith.constant 0 : i32
    %c0_i32_1 = arith.constant 0 : i32
    return %c0_i32, %c0_i32_0 : i32, i32
  }
  func.func @transform_3(%arg0: i32) -> (i32, i32) {
    %c0_i32 = arith.constant 0 : i32
    %c0_i32_0 = arith.constant 0 : i32
    %c0_i32_1 = arith.constant 0 : i32
    return %c0_i32, %c0_i32_0 : i32, i32
  }
  func.func @transform_4(%arg0: i32) -> (i32, i32) {
    %c0_i32 = arith.constant 0 : i32
    %c0_i32_0 = arith.constant 0 : i32
    %c0_i32_1 = arith.constant 0 : i32
    return %c0_i32, %c0_i32_0 : i32, i32
  }
  func.func @transform_5(%arg0: i32) -> (i32, i32) {
    %c0_i32 = arith.constant 0 : i32
    %c0_i32_0 = arith.constant 0 : i32
    return %arg0, %c0_i32 : i32, i32
  }
}

</mosaic_0001>

<bundles_post_ra>
// kernel: mlp_forward.1
= control target key start
LH: loop header
LB: loop body
LE: loop exit
PB: predicated region body
PF: predicated region fallthrough
CT: control target
= control target key end

     0   :  { %s604_s18 = smov 0   ;;  %s718_s0 = inlined_call_operand.vmem [shape: f32[16,32], index: 0, kind: input, shape index: {}]   ;;  %s719_s1 = inlined_call_operand.vmem [shape: f32[32,128], index: 1, kind: input, shape index: {}]   ;;  %s720_s2 = inlined_call_operand.vmem [shape: f32[1,128], index: 2, kind: input, shape index: {}]   ;;  %s721_s3 = inlined_call_operand.vmem [shape: f32[128,128], index: 3, kind: input, shape index: {}]   ;;  %s722_s4 = inlined_call_operand.vmem [shape: f32[1,128], index: 4, kind: input, shape index: {}]   ;;  %s723_s5 = inlined_call_operand.vmem [shape: f32[16,128], index: 5, kind: output, shape index: {}]  }
   0x1 LB: > { %s470_s19 = sadd.s32 4294967295, %s570_s18   ;;  %p474_p0 = scmp.ge.s32.totalorder %s570_s18, 1  ;;  %s570_s18 = sphi %s604_s18, %s15_s18  }
   0x2   : > { %p186_p1 = scmp.lt.s32.totalorder %s570_s18, 3 }
   0x4   : > { %p187_p2 = pnand %p474_p0, %p186_p1 }
   0x5   : > { %p212_p3 = scmp.lt.s32.totalorder (!%p187_p2), %s470_s19, 1 }
   0x6   : > { %190 = sbr.rel (%p187_p2) target bundleno = 730 (0x2da), region = 40 }
   0xb   : > { %v224_v0 = vld [vmem:[%s719_s1 + $0x18] sm:$0xff]  ;;  %v572_v1 = vmov 0.0   ;;  %v223_v2 = vld [vmem:[%s719_s1 + $0x10] sm:$0xff]  ;;  %vm573_vm0 = vmmov 0   ;;  %s725_s19 = smov (!%p212_p3, %s470_s19), 1  ;;  %v222_v5 = vld [vmem:[%s719_s1 + $0x8] sm:$0xff]  ;;  %v401_v27 = vlaneseq }
   0xc   : > { %504 = vmatprep.subr.mxu0 %v572_v1  ;;  %512 = vmatprep.mubr.msk.f32.mxu0 %vm573_vm0, %v572_v1  ;;  %v322_v3 = vld [vmem:[%s721_s3 + $0x78] sm:$0xff]  ;;  %v321_v4 = vld [vmem:[%s721_s3 + $0x70] sm:$0xff]  ;;  %s475_s30 = sshll.u32 %s725_s19, 3  ;;  %v320_v6 = vld [vmem:[%s721_s3 + $0x68] sm:$0xff]  ;;  %vm232_vm1 = vcmask 261120  }
   0xd   : > { %505 = vmatpush3.msra.mxu0 %v224_v0  ;;  %515 = vmatprep.subr.mxu1 %v572_v1  ;;  %v221_v7 = vld [vmem:[%s719_s1] sm:$0xff]  ;;  %s215_s12 = scalar_lea.vmem %s718_s0, %s475_s30  ;;  %v318_v10 = vld [vmem:[%s721_s3 + $0x58] sm:$0xff]  ;;  %v317_v11 = vld [vmem:[%s721_s3 + $0x50] sm:$0xff]  ;;  %v402_v29 = vand.u32 127, %v401_v27  ;;  %s219_s25 = scalar_lea.vmem %s723_s5, %s475_s30 }
   0xe   : > { %506 = vmatprep.subr.mxu0 %v572_v1  ;;  %516 = vmatpush3.msra.mxu1 %v322_v3  ;;  %v220_v8 = vld [vmem:[%s215_s12] sm:$0xff]  ;;  %v316_v12 = vld [vmem:[%s721_s3 + $0x48] sm:$0xff]  ;;  %v314_v14 = vld [vmem:[%s721_s3 + $0x38] sm:$0xff] }
   0xf   : > { %507 = vmatpush3.msra.mxu0 %v223_v2  ;;  %517 = vmatprep.subr.mxu1 %v572_v1  ;;  %v319_v9 = vld [vmem:[%s721_s3 + $0x60] sm:$0xff]  ;;  %v313_v15 = vld [vmem:[%s721_s3 + $0x30] sm:$0xff]  ;;  %v312_v16 = vld [vmem:[%s721_s3 + $0x28] sm:$0xff]  ;;  %vm403_vm2 = vcmp.lt.s32.totalorder %v402_v29, 16 }
  0x10   : > { %508 = vmatprep.subr.mxu0 %v572_v1  ;;  %518 = vmatpush3.msra.mxu1 %v321_v4  ;;  %v315_v13 = vld [vmem:[%s721_s3 + $0x40] sm:$0xff]  ;;  %v310_v18 = vld [vmem:[%s721_s3 + $0x18] sm:$0xff]  ;;  %v309_v19 = vld [vmem:[%s721_s3 + $0x10] sm:$0xff] }
  0x11   : > { %509 = vmatpush3.msra.mxu0 %v222_v5  ;;  %519 = vmatprep.subr.mxu1 %v572_v1  ;;  %v311_v17 = vld [vmem:[%s721_s3 + $0x20] sm:$0xff]  ;;  %v308_v20 = vld [vmem:[%s721_s3 + $0x8] sm:$0xff] }
  0x12   : > { %510 = vmatprep.subr.mxu0 %v572_v1  ;;  %520 = vmatpush3.msra.mxu1 %v320_v6  ;;  %v307_v21 = vld [vmem:[%s721_s3] sm:$0xff] }
  0x13   : > { %511 = vmatpush3.msra.mxu0 %v221_v7  ;;  %521 = vmatprep.subr.mxu1 %v572_v1  ;;  %v477_v22 = vld [vmem:[%s720_s2] ss:$0 sm:$0xff] }
  0x14   : > { %513 = vmatmul.mubr.msk.f32.vlgmr.msra.gmra.mxu0 %vm232_vm1, %v220_v8  ;;  %522 = vmatpush3.msra.mxu1 %v319_v9  ;;  %v479_v28 = vld [vmem:[%s722_s4] ss:$0 sm:$0xff] }
  0x15   : > { %523 = vmatprep.subr.mxu1 %v572_v1  ;;  %547 = vmatprep.mubr.msk.f32.mxu1 %vm573_vm0, %v572_v1 }
  0x16   : > { %524 = vmatpush3.msra.mxu1 %v318_v10 }
  0x17   : > { %525 = vmatprep.subr.mxu1 %v572_v1 }
  0x18   : > { %526 = vmatpush3.msra.mxu1 %v317_v11 }
  0x19   : > { %527 = vmatprep.subr.mxu1 %v572_v1 }
  0x1a   : > { %528 = vmatpush3.msra.mxu1 %v316_v12 }
  0x1b   : > { %529 = vmatprep.subr.mxu1 %v572_v1 }
  0x1c   : > { %530 = vmatpush3.msra.mxu1 %v315_v13 }
  0x1d   : > { %531 = vmatprep.subr.mxu1 %v572_v1 }
  0x1e   : > { %532 = vmatpush3.msra.mxu1 %v314_v14 }
  0x1f   : > { %533 = vmatprep.subr.mxu1 %v572_v1 }
  0x20   : > { %534 = vmatpush3.msra.mxu1 %v313_v15 }
  0x21   : > { %535 = vmatprep.subr.mxu1 %v572_v1 }
  0x22   : > { %536 = vmatpush3.msra.mxu1 %v312_v16 }
  0x23   : > { %537 = vmatprep.subr.mxu1 %v572_v1 }
  0x24   : > { %538 = vmatpush3.msra.mxu1 %v311_v17 }
  0x25   : > { %539 = vmatprep.subr.mxu1 %v572_v1 }
  0x26   : > { %540 = vmatpush3.msra.mxu1 %v310_v18 }
  0x27   : > { %541 = vmatprep.subr.mxu1 %v572_v1 }
  0x28   : > { %542 = vmatpush3.msra.mxu1 %v309_v19 }
  0x29   : > { %543 = vmatprep.subr.mxu1 %v572_v1 }
  0x2a   : > { %544 = vmatpush3.msra.mxu1 %v308_v20 }
  0x2b   : > { %545 = vmatprep.subr.mxu1 %v572_v1 }
  0x2c   : > { %546 = vmatpush3.msra.mxu1 %v307_v21 }
  0xd4   : > { %v302_v23 = vpop.f32.mrf.mxu0 }
  0xd5   : > { %v303_v24 = vadd.f32 %v477_v22, %v302_v23 }
  0xd6   : > { %v514_v25 = vpop.f32.mrf.mxu0 }
  0xd7   : > { %v306_v26 = vmax.f32 %v303_v24, 0.0 }
  0xd9   : > { %548 = vmatmul.mubr.f32.vlgmr.msra.gmra.mxu1 %v306_v26 }
 0x199   : > { %v396_v30 = vpop.f32.mrf.mxu1 }
 0x19a   : > { %v397_v31 = vadd.f32 %v479_v28, %v396_v30 }
 0x19b   : > { %v549_v32 = vpop.f32.mrf.mxu1 }
 0x19c   : > { %v400_v33 = vmax.f32 %v397_v31, 0.0 }
 0x19e   : > { %v404_v34 = vsel %vm403_vm2, %v400_v33, -1e+30 }
 0x19f   : > { %405 = vmax.xlane.f32.xlu0 %v404_v34 }
 0x228   : > { %v406_v35 = vpop.xlane.xlu0 %405 }
 0x229   : > { %v407_v36 = vsub.f32 %v404_v34, %v406_v35 }
 0x22b   : > { %v408_v37 = vmul.f32 1.442695, %v407_v36 }
 0x22d   : > { %560 = vpow2.f32 %v408_v37 }
 0x23a   : > { %v561_v38 = vpop.eup %560 }
 0x23b   : > { %410 = vadd.xlane.f32.xlu0 %v561_v38 }
 0x2c4   : > { %v411_v39 = vpop.xlane.xlu0 %410 }
 0x2c5   : > { %562 = vlog2.f32 %v411_v39 }
 0x2d2   : > { %v563_v40 = vpop.eup %562 }
 0x2d3   : > { %v413_v41 = vmul.f32 0.6931472, %v563_v40 }
 0x2d5   : > { %v414_v42 = vadd.f32 %v413_v41, %v406_v35 }
 0x2d7   : > { %v415_v43 = vsub.f32 %v404_v34, %v414_v42 }
 0x2d9   : > { %416 = vst [vmem:[%s219_s25] sm:$0xff] %v415_v43 }
 0x2da PF: > { %s15_s18 = sadd.s32 1, %s570_s18  }
 0x2db   : > { %p12_p4 = scmp.ge.s32.totalorder %s15_s18, 4  }
 0x2dd   :  { %14 = sbr.rel (!%p12_p4) target bundleno = 1 (0x1), region = 70 }

</bundles_post_ra>
